<compile_context>
chip_gen: v7x
topology: tpu7x:2x2x1
jax: 0.10.0
libtpu: 0.0.40
codegen_flags: <defaults>
</compile_context>

<pallas_src>
import functools

import jax
import jax.numpy as jnp
from jax.experimental import pallas as pl
from jax.experimental.pallas import tpu as pltpu

NEG_SLOPE = 0.01  # PyTorch nn.LeakyReLU default


# ------------------------------- small helpers ----------------------------- #
def _cdiv(a, b):
    return -(-a // b)


def _round_up(n, m):
    return ((n + m - 1) // m) * m


def _pad2(a, rows, cols):
    out = jnp.zeros((rows, cols), a.dtype)
    return out.at[: a.shape[0], : a.shape[1]].set(a)


def _pad1(a, n):
    out = jnp.zeros((n,), a.dtype)
    return out.at[: a.shape[0]].set(a)


def _largest_divisor_leq(n, cap):
    cap = max(1, min(n, cap))
    for d in range(cap, 0, -1):
        if n % d == 0:
            return d
    return 1


def _node_tiling(n, granule, max_tile=2048):
    """Pad node rows to a multiple of `granule`; pick a tile (multiple of
    `granule`, dividing the padded count, <= max_tile) that keeps >=2 grid
    points when possible (v7x megacore) with minimal padding waste."""
    ng = _round_up(max(n, 1), granule)
    if ng <= granule:
        return ng, ng
    target = min(max_tile, _round_up(_cdiv(ng, 2), granule))
    n_tiles = _cdiv(ng, target)
    tile = _round_up(_cdiv(ng, n_tiles), granule)
    return tile * n_tiles, tile


def _edge_tiling(e, granule, mlp_max=1024, sc_tile=256):
    """One shared edge padding serving both kernels: a large tile for the
    (parallel) edge-MLP grid and a small tile for the scatter reduction axis
    (cheap one-hot, more reuse of the resident node block per HBM read).
    Multi-tile scatter edge blocks must be multiples of 128 (col row block)."""
    eg = _round_up(max(e, 1), granule)
    if eg <= sc_tile:
        half = eg // 2
        mlp_tile = half if (eg > granule and half % granule == 0) else eg
        return eg, mlp_tile, eg
    e_pad = _round_up(eg, sc_tile)
    n_blk = e_pad // sc_tile
    cap = min(mlp_max // sc_tile, max(1, n_blk // 2))   # >=2 parallel MLP tiles
    mlp_tile = sc_tile * _largest_divisor_leq(n_blk, cap)
    return e_pad, mlp_tile, sc_tile


# --------------------- Kernel A: gather + MLP1 over edges ------------------ #
def _edge_mlp_kernel(*refs, n_layers, act_flags, fused_gather):
    """fused_gather: refs = (row, x_full, edge_attr, wa, wb, b0, [w,b]*, out)
       else:         refs = (x_row,        edge_attr, wa, wb, b0, [w,b]*, out)

    Layer 0:  h = x[row] @ wa + edge_attr @ wb + b0   (concat folded into split matmul)
    Layer l:  h = h @ w_l + b_l ; LeakyReLU where flagged.  f32 accumulation,
    intermediates never leave VMEM/vregs."""
    if fused_gather:
        row_ref, x_ref, ea_ref = refs[:3]
        mid = refs[3:-1]
    else:
        xr_ref, ea_ref = refs[:2]
        mid = refs[2:-1]
    o_ref = refs[-1]
    wa_ref, wb_ref, b0_ref = mid[:3]
    layer_refs = mid[3:]

    if fused_gather:
        # x[row] gather done on the MXU: one-hot(tile_e, N_pad) @ x(N_pad, Xp).
        # Exactly one 1.0 per row -> exact gather; x stays resident in VMEM and
        # no [E_pad, Xp] gather temp ever touches HBM.
        tile_e = ea_ref.shape[0]
        n_pad = x_ref.shape[0]
        node_ids = jax.lax.broadcasted_iota(jnp.int32, (tile_e, n_pad), 1)
        sel = (node_ids == row_ref[...]).astype(x_ref.dtype)   # row_ref: (tile_e, 1)
        a = jnp.dot(sel, x_ref[...],
                    preferred_element_type=jnp.float32).astype(x_ref.dtype)
    else:
        a = xr_ref[...]

    h = jnp.dot(a, wa_ref[...], preferred_element_type=jnp.float32)
    h = h + jnp.dot(ea_ref[...], wb_ref[...], preferred_element_type=jnp.float32)
    h = h + b0_ref[...]
    if act_flags[0]:
        h = jnp.where(h >= 0, h, NEG_SLOPE * h)

    for l in range(1, n_layers):
        w_ref = layer_refs[2 * (l - 1)]
        b_ref = layer_refs[2 * (l - 1) + 1]
        h = jnp.dot(h.astype(w_ref.dtype), w_ref[...],
                    preferred_element_type=jnp.float32) + b_ref[...]
        if act_flags[l]:
            h = jnp.where(h >= 0, h, NEG_SLOPE * h)

    o_ref[...] = h.astype(o_ref.dtype)


def pallas_edge_mlp(ea, mlp1, *, tile_e, row=None, x_full=None, xr=None):
    wa, wb, b0, layers, act_flags, f1_pad = mlp1
    E_pad = ea.shape[0]
    assert E_pad % tile_e == 0
    fused_gather = xr is None

    in_specs, args = [], []
    if fused_gather:
        in_specs.append(pl.BlockSpec((tile_e, 1), lambda i: (i, 0)))           # row ids
        in_specs.append(pl.BlockSpec(x_full.shape, lambda i: (0, 0)))          # x resident
        args += [row, x_full]
    else:
        in_specs.append(pl.BlockSpec((tile_e, xr.shape[1]), lambda i: (i, 0)))
        args.append(xr)
    in_specs.append(pl.BlockSpec((tile_e, ea.shape[1]), lambda i: (i, 0)))
    args.append(ea)

    h0 = wa.shape[1]
    in_specs += [pl.BlockSpec(wa.shape, lambda i: (0, 0)),
                 pl.BlockSpec(wb.shape, lambda i: (0, 0)),
                 pl.BlockSpec((1, h0), lambda i: (0, 0))]
    args += [wa, wb, b0]
    for w, bl in layers:
        in_specs.append(pl.BlockSpec(w.shape, lambda i: (0, 0)))
        in_specs.append(pl.BlockSpec((1, w.shape[1]), lambda i: (0, 0)))
        args += [w, bl]

    kernel = functools.partial(_edge_mlp_kernel, n_layers=1 + len(layers),
                               act_flags=tuple(act_flags), fused_gather=fused_gather)
    return pl.pallas_call(
        kernel,
        out_shape=jax.ShapeDtypeStruct((E_pad, f1_pad), ea.dtype),
        grid_spec=pltpu.PrefetchScalarGridSpec(
            num_scalar_prefetch=0,
            grid=(E_pad // tile_e,),
            in_specs=in_specs,
            out_specs=pl.BlockSpec((tile_e, f1_pad), lambda i: (i, 0)),
        ),
        compiler_params=pltpu.CompilerParams(dimension_semantics=("parallel",)),
    )(*args)


# ----------------- Kernel B: scatter_mean + MLP2 over nodes ---------------- #
def _scatter_mlp2_kernel(*refs, n_layers, act_flags, count_col):
    """refs = (col, h_edge, x_nodes, w2a, w2b, b2_0, [w,b]*, out, acc_scratch).

    Grid = (node tiles [parallel], edge tiles [arbitrary/reduction]).
    Per edge tile: acc += one-hot(tile_n, tile_e) @ h_edge  (counts ride in
    column `count_col` of h_edge).  On the last edge tile: normalize (mean,
    empty -> 0) and run the whole MLP2 on the resident block, then store the
    final model output — the scatter result never round-trips through HBM."""
    col_ref, vals_ref, x_ref = refs[:3]
    w_refs = refs[3:-2]
    o_ref, acc_ref = refs[-2], refs[-1]

    e = pl.program_id(1)
    tile_n = acc_ref.shape[0]

    @pl.when(e == 0)
    def _():
        acc_ref[...] = jnp.zeros_like(acc_ref)

    # One-hot built in VMEM only.  Offset applied to the small (1, tile_e) col
    # row (not the full (tile_n, tile_e) iota) to cut VPU work; padded edges
    # carry col == -1 and match no node.
    n_off = pl.program_id(0) * tile_n
    col_shift = col_ref[...] - n_off                                   # (1, tile_e)
    ids = jax.lax.broadcasted_iota(jnp.int32, (tile_n, col_shift.shape[1]), 0)
    onehot = (ids == col_shift).astype(vals_ref.dtype)
    acc_ref[...] += jnp.dot(onehot, vals_ref[...], preferred_element_type=jnp.float32)

    @pl.when(e == pl.num_programs(1) - 1)
    def _():
        wa_ref, wb_ref, b0_ref = w_refs[:3]
        layer_refs = w_refs[3:]

        acc = acc_ref[...]
        counts = acc[:, count_col:count_col + 1]
        # Exact reciprocal keeps parity with the f32 reference tolerance.
        inv = pl.reciprocal(jnp.maximum(counts, 1.0), approx=False)
        hmean = (acc * inv).astype(wb_ref.dtype)                       # mean; empty -> 0

        # MLP2 layer 0: cat([x, hmean]) folded into a split matmul.  Rows of
        # w2b beyond out_size are zero, so the count / pad columns are inert.
        h = jnp.dot(x_ref[...], wa_ref[...], preferred_element_type=jnp.float32)
        h = h + jnp.dot(hmean, wb_ref[...], preferred_element_type=jnp.float32)
        h = h + b0_ref[...]
        if act_flags[0]:
            h = jnp.where(h >= 0, h, NEG_SLOPE * h)
        for l in range(1, n_layers):
            w_ref = layer_refs[2 * (l - 1)]
            b_ref = layer_refs[2 * (l - 1) + 1]
            h = jnp.dot(h.astype(w_ref.dtype), w_ref[...],
                        preferred_element_type=jnp.float32) + b_ref[...]
            if act_flags[l]:
                h = jnp.where(h >= 0, h, NEG_SLOPE * h)
        o_ref[...] = h.astype(o_ref.dtype)


def pallas_scatter_mlp2(col, h, x_p, mlp2, *, tile_n, tile_e, count_col, out_dtype):
    wa, wb, b0, layers, act_flags, out_pad = mlp2
    E_pad, f1_pad = h.shape
    N_pad, x_pad = x_p.shape
    assert E_pad % tile_e == 0 and N_pad % tile_n == 0

    in_specs = [
        pl.BlockSpec((1, tile_e), lambda n, e: (0, e)),            # destinations
        pl.BlockSpec((tile_e, f1_pad), lambda n, e: (e, 0)),       # per-edge MLP1 output
        pl.BlockSpec((tile_n, x_pad), lambda n, e: (n, 0)),        # node features
        pl.BlockSpec(wa.shape, lambda n, e: (0, 0)),
        pl.BlockSpec(wb.shape, lambda n, e: (0, 0)),
        pl.BlockSpec((1, wa.shape[1]), lambda n, e: (0, 0)),
    ]
    args = [col, h, x_p, wa, wb, b0]
    for w, bl in layers:
        in_specs.append(pl.BlockSpec(w.shape, lambda n, e: (0, 0)))
        in_specs.append(pl.BlockSpec((1, w.shape[1]), lambda n, e: (0, 0)))
        args += [w, bl]

    kernel = functools.partial(_scatter_mlp2_kernel, n_layers=1 + len(layers),
                               act_flags=tuple(act_flags), count_col=count_col)
    return pl.pallas_call(
        kernel,
        out_shape=jax.ShapeDtypeStruct((N_pad, out_pad), out_dtype),
        grid_spec=pltpu.PrefetchScalarGridSpec(
            num_scalar_prefetch=0,
            grid=(N_pad // tile_n, E_pad // tile_e),    # reduction (edges) last
            in_specs=in_specs,
            out_specs=pl.BlockSpec((tile_n, out_pad), lambda n, e: (n, 0)),
            scratch_shapes=[pltpu.VMEM((tile_n, f1_pad), jnp.float32)],
        ),
        compiler_params=pltpu.CompilerParams(
            dimension_semantics=("parallel", "arbitrary")),
    )(*args)


# --------------------------- parameter construction ------------------------ #
def create_mlp_params(key, in_size, out_size, n_hidden, hidden_size):
    """Mirrors CreateMLP(..., activate_last=False, layer_norm=False).
    Returns list of (W [in,out], b [out], apply_act) per Linear layer."""
    params = []
    l_in = in_size
    for _ in range(n_hidden):
        key, kw, kb = jax.random.split(key, 3)
        bound = 1.0 / jnp.sqrt(l_in)
        w = jax.random.uniform(kw, (l_in, hidden_size), jnp.float32, -bound, bound)
        b = jax.random.uniform(kb, (hidden_size,), jnp.float32, -bound, bound)
        params.append((w, b, True))                   # Linear + LeakyReLU
        l_in = hidden_size
    key, kw, kb = jax.random.split(key, 3)
    bound = 1.0 / jnp.sqrt(l_in)
    w = jax.random.uniform(kw, (l_in, out_size), jnp.float32, -bound, bound)
    b = jax.random.uniform(kb, (out_size,), jnp.float32, -bound, bound)
    params.append((w, b, False))                      # final Linear, no activation
    return params


def pad_mlp_split_first(params, ka, kb, *, dtype=jnp.float32, count_col=None,
                        ka_pad=None, kb_pad=None):
    """Pad an MLP's params to 128-lane shapes, cast weights to `dtype` (biases
    stay f32), and split the first Linear's weight over the two concatenated
    inputs (widths ka, kb).  If `count_col` is given, a 1.0 is planted in the
    LAST layer's zero-padded bias at that column so every output row carries an
    exact 1.0 there (last layer has no activation; LeakyReLU would also
    preserve it) — used to fuse scatter-mean counts into the scatter matmul.

    Returns (wa, wb, bias0[1,H], layers[(w, b[1,Ho])], act_flags, out_pad)."""
    n_layers = len(params)
    ka_p = ka_pad if ka_pad is not None else _round_up(ka, 128)
    kb_p = kb_pad if kb_pad is not None else _round_up(kb, 128)

    def _out_pad(li, out):
        p = _round_up(out, 128)
        if count_col is not None and li == n_layers - 1 and count_col >= p:
            p = _round_up(count_col + 1, 128)          # guarantee a spare column
        return p

    w0, b0, a0 = params[0]
    assert w0.shape[0] == ka + kb
    h0p = _out_pad(0, w0.shape[1])
    wa = _pad2(w0[:ka], ka_p, h0p).astype(dtype)
    wb = _pad2(w0[ka:], kb_p, h0p).astype(dtype)
    bias0 = _pad1(b0, h0p)
    if count_col is not None and n_layers == 1:
        bias0 = bias0.at[count_col].set(1.0)
    bias0 = bias0.reshape(1, h0p)

    layers, act_flags, prev = [], [bool(a0)], h0p
    for li in range(1, n_layers):
        w, b, a = params[li]
        op = _out_pad(li, w.shape[1])
        wp = _pad2(w, prev, op).astype(dtype)
        bp = _pad1(b, op)
        if count_col is not None and li == n_layers - 1:
            bp = bp.at[count_col].set(1.0)
        layers.append((wp, bp.reshape(1, op)))
        act_flags.append(bool(a))
        prev = op
    return wa, wb, bias0, layers, tuple(act_flags), prev


def build_node_model(params1, params2, x_size, e_feat, out_size, dtype=jnp.float32):
    """Pre-pad / split / cast all weights once (outside the hot path).
    dtype=jnp.bfloat16 enables the bf16 MXU datapath for v6e/v7x (f32 accum)."""
    x_pad = _round_up(x_size, 128)
    e_pad = _round_up(e_feat, 128)
    mlp1 = pad_mlp_split_first(params1, x_size, e_feat, dtype=dtype,
                               count_col=out_size, ka_pad=x_pad, kb_pad=e_pad)
    f1_pad = mlp1[-1]
    mlp2 = pad_mlp_split_first(params2, x_size, out_size, dtype=dtype,
                               ka_pad=x_pad, kb_pad=f1_pad)
    return {
        "out_size": out_size,
        "x_pad": x_pad,
        "e_pad": e_pad,
        "dtype": dtype,
        "mlp1": mlp1,
        "mlp2": mlp2,
        # In-kernel (MXU one-hot) gather only while x fits comfortably resident
        # in VMEM and the one-hot temp stays small.
        "gather_max_nodes": 1024,
    }


# ------------------------------- NodeModel --------------------------------- #
def node_model_forward(model, x, edge_index, edge_attr, u=None, batch=None):
    # u and batch are unused by NodeModel.forward (kept for signature parity).
    # TODO(synk): gpu_tracker.track() (MemTracker) has no Pallas/JAX equivalent.
    N, _ = x.shape
    E, _ = edge_attr.shape
    out_size = model["out_size"]
    cdtype = model["dtype"]

    row = edge_index[0].astype(jnp.int32)
    col = edge_index[1].astype(jnp.int32)

    granule = 8 * (4 // jnp.dtype(cdtype).itemsize)     # 8 for f32, 16 for bf16
    E_pad, mlp_tile_e, sc_tile_e = _edge_tiling(E, granule)
    N_pad, tile_n = _node_tiling(N, granule)

    # Zero-pad rows + features to lane-dense shapes.  Padded edges: row -> 0
    # (harmless gather), col -> -1 (never scattered); padded node rows are
    # sliced off at the end.
    x_p = _pad2(x, N_pad, model["x_pad"]).astype(cdtype)
    ea_p = _pad2(edge_attr, E_pad, model["e_pad"]).astype(cdtype)
    row_p = jnp.zeros((E_pad, 1), jnp.int32).at[:E, 0].set(row)
    col_p = jnp.full((1, E_pad), -1, jnp.int32).at[0, :E].set(col)

    if N_pad <= model["gather_max_nodes"]:
        # Gather + cat + whole MLP1 fused in one kernel; x resident in VMEM.
        h = pallas_edge_mlp(ea_p, model["mlp1"], tile_e=mlp_tile_e,
                            row=row_p, x_full=x_p)                      # [E_pad, F1p]
    else:
        # TODO(synk): large-graph fallback keeps the x[row] gather in XLA; a
        # sorted-by-col segment scatter with scalar-prefetch offsets would
        # remove both this gather and the O(N*E) one-hot below.
        xr_p = x_p[row_p[:, 0]]
        h = pallas_edge_mlp(ea_p, model["mlp1"], tile_e=mlp_tile_e, xr=xr_p)

    # scatter_mean (counts riding in column `out_size` of h) + whole MLP2 fused
    # in one kernel; the scatter result stays VMEM-resident.
    out = pallas_scatter_mlp2(col_p, h, x_p, model["mlp2"],
                              tile_n=tile_n, tile_e=sc_tile_e,
                              count_col=out_size, out_dtype=x.dtype)    # [N_pad, F2p]
    return out[:N, :out_size]


# ----------------------------- pure-JAX reference --------------------------- #
def _ref_forward(params1, params2, x, edge_index, edge_attr):
    def mlp(params, z):
        for w, b, act in params:
            z = z @ w + b
            if act:
                z = jnp.where(z >= 0, z, NEG_SLOPE * z)
        return z

    row, col = edge_index[0], edge_index[1]
    h = jnp.concatenate([x[row], edge_attr], axis=1)
    h = mlp(params1, h)
    sums = jax.ops.segment_sum(h, col, num_segments=x.shape[0])
    cnts = jax.ops.segment_sum(
        jnp.ones((h.shape[0],), x.dtype), col, num_segments=x.shape[0]
    )
    h = sums / jnp.maximum(cnts, 1.0)[:, None]
    h = jnp.concatenate([x, h], axis=1)
    return mlp(params2, h)


if __name__ == "__main__":
    # Small, module-consistent shapes.
    N = 16          # nodes
    E = 32          # edges
    x_size = 8
    e_feat = 8
    in_size = x_size + e_feat          # node_mlp_1 input = cat([x[row], edge_attr])
    out_size = 8
    n_hidden = 2
    hidden_size = 32

    key = jax.random.PRNGKey(0)
    k_x, k_e, k_ei, k_p1, k_p2, k_u = jax.random.split(key, 6)

    x = jax.random.normal(k_x, (N, x_size), jnp.float32)
    edge_attr = jax.random.normal(k_e, (E, e_feat), jnp.float32)
    edge_index = jax.random.randint(k_ei, (2, E), 0, N, jnp.int32)
    u = jax.random.normal(k_u, (1, 4), jnp.float32)     # unused, parity only
    batch = jnp.zeros((N,), jnp.int32)                   # unused, parity only

    params1 = create_mlp_params(k_p1, in_size, out_size, n_hidden, hidden_size)
    params2 = create_mlp_params(k_p2, x_size + out_size, out_size, n_hidden, hidden_size)

    ref = _ref_forward(params1, params2, x, edge_index, edge_attr)

    # 1) f32, fully fused path (in-kernel gather + fused scatter/MLP2).
    model = build_node_model(params1, params2, x_size, e_feat, out_size)
    out = jax.block_until_ready(node_model_forward(model, x, edge_index, edge_attr, u, batch))
    assert out.shape == (N, out_size)
    assert jnp.allclose(out, ref, atol=5e-4, rtol=5e-4), float(jnp.max(jnp.abs(out - ref)))

    # 2) f32, large-graph fallback path (XLA gather) — exercised for coverage.
    model_fb = dict(model, gather_max_nodes=0)
    out_fb = jax.block_until_ready(node_model_forward(model_fb, x, edge_index, edge_attr, u, batch))
    assert jnp.allclose(out_fb, ref, atol=5e-4, rtol=5e-4), float(jnp.max(jnp.abs(out_fb - ref)))

    # 3) bf16 MXU datapath (v6e/v7x): weights + streamed activations bf16,
    #    f32 accumulation and f32 elementwise math; looser tolerance.
    model_bf16 = build_node_model(params1, params2, x_size, e_feat, out_size,
                                  dtype=jnp.bfloat16)
    out_bf16 = jax.block_until_ready(
        node_model_forward(model_bf16, x, edge_index, edge_attr, u, batch))
    assert jnp.allclose(out_bf16, ref, atol=5e-2, rtol=5e-2), float(
        jnp.max(jnp.abs(out_bf16 - ref)))

    print("KERNEL_OK")
</pallas_src>

<mosaic_0001>
module attributes {stable_mosaic.version = 11 : i64} {
  func.func @_edge_mlp_kernel(%arg0: i32, %arg1: memref<16x1xi32, #tpu.memory_space<vmem>>, %arg2: memref<16x128xf32, #tpu.memory_space<vmem>>, %arg3: memref<16x128xf32, #tpu.memory_space<vmem>>, %arg4: memref<128x128xf32, #tpu.memory_space<vmem>>, %arg5: memref<128x128xf32, #tpu.memory_space<vmem>>, %arg6: memref<1x128xf32, #tpu.memory_space<vmem>>, %arg7: memref<128x128xf32, #tpu.memory_space<vmem>>, %arg8: memref<1x128xf32, #tpu.memory_space<vmem>>, %arg9: memref<128x128xf32, #tpu.memory_space<vmem>>, %arg10: memref<1x128xf32, #tpu.memory_space<vmem>>, %arg11: memref<16x128xf32, #tpu.memory_space<vmem>>) attributes {dimension_semantics = [#tpu.dimension_semantics<parallel>], iteration_bounds = array<i64: 2>, scalar_prefetch = 0 : i64, scratch_operands = 0 : i64, tpu.core_type = #tpu.core_type<tc>, window_params = [{transform_indices = @transform_0, window_bounds = array<i64: 16, 1>}, {pipeline_mode = #tpu.pipeline_mode<synchronous>, transform_indices = @transform_1, window_bounds = array<i64: 16, 128>}, {transform_indices = @transform_2, window_bounds = array<i64: 16, 128>}, {pipeline_mode = #tpu.pipeline_mode<synchronous>, transform_indices = @transform_3, window_bounds = array<i64: 128, 128>}, {pipeline_mode = #tpu.pipeline_mode<synchronous>, transform_indices = @transform_4, window_bounds = array<i64: 128, 128>}, {pipeline_mode = #tpu.pipeline_mode<synchronous>, transform_indices = @transform_5, window_bounds = array<i64: 1, 128>}, {pipeline_mode = #tpu.pipeline_mode<synchronous>, transform_indices = @transform_6, window_bounds = array<i64: 128, 128>}, {pipeline_mode = #tpu.pipeline_mode<synchronous>, transform_indices = @transform_7, window_bounds = array<i64: 1, 128>}, {pipeline_mode = #tpu.pipeline_mode<synchronous>, transform_indices = @transform_8, window_bounds = array<i64: 128, 128>}, {pipeline_mode = #tpu.pipeline_mode<synchronous>, transform_indices = @transform_9, window_bounds = array<i64: 1, 128>}, {transform_indices = @transform_10, window_bounds = array<i64: 16, 128>}]} {
    %0 = tpu.iota {dimensions = array<i32: 1>} : vector<16x16xi32>
    %c0 = arith.constant 0 : index
    %c0_0 = arith.constant 0 : index
    %1 = vector.load %arg1[%c0, %c0_0] : memref<16x1xi32, #tpu.memory_space<vmem>>, vector<16x1xi32>
    %2 = vector.broadcast %1 : vector<16x1xi32> to vector<16x16xi32>
    %3 = arith.cmpi eq, %0, %2 : vector<16x16xi32>
    %4 = arith.extui %3 : vector<16x16xi1> to vector<16x16xi32>
    %5 = arith.sitofp %4 : vector<16x16xi32> to vector<16x16xf32>
    %c0_1 = arith.constant 0 : index
    %c0_2 = arith.constant 0 : index
    %6 = vector.load %arg2[%c0_1, %c0_2] : memref<16x128xf32, #tpu.memory_space<vmem>>, vector<16x128xf32>
    %cst = arith.constant dense<0.000000e+00> : vector<16x128xf32>
    %7 = tpu.matmul %5, %6, %cst {dimension_numbers = #tpu.dot_dimension_numbers<[1], [0], [0], [1], [0, 0, 1, 1], [], []>} : vector<16x16xf32>, vector<16x128xf32>, vector<16x128xf32> -> vector<16x128xf32>
    %c0_3 = arith.constant 0 : index
    %c0_4 = arith.constant 0 : index
    %8 = vector.load %arg4[%c0_3, %c0_4] : memref<128x128xf32, #tpu.memory_space<vmem>>, vector<128x128xf32>
    %cst_5 = arith.constant dense<0.000000e+00> : vector<16x128xf32>
    %9 = tpu.matmul %7, %8, %cst_5 {dimension_numbers = #tpu.dot_dimension_numbers<[1], [0], [0], [1], [0, 0, 1, 1], [], []>} : vector<16x128xf32>, vector<128x128xf32>, vector<16x128xf32> -> vector<16x128xf32>
    %c0_6 = arith.constant 0 : index
    %c0_7 = arith.constant 0 : index
    %10 = vector.load %arg3[%c0_6, %c0_7] : memref<16x128xf32, #tpu.memory_space<vmem>>, vector<16x128xf32>
    %c0_8 = arith.constant 0 : index
    %c0_9 = arith.constant 0 : index
    %11 = vector.load %arg5[%c0_8, %c0_9] : memref<128x128xf32, #tpu.memory_space<vmem>>, vector<128x128xf32>
    %cst_10 = arith.constant dense<0.000000e+00> : vector<16x128xf32>
    %12 = tpu.matmul %10, %11, %cst_10 {dimension_numbers = #tpu.dot_dimension_numbers<[1], [0], [0], [1], [0, 0, 1, 1], [], []>} : vector<16x128xf32>, vector<128x128xf32>, vector<16x128xf32> -> vector<16x128xf32>
    %13 = arith.addf %9, %12 : vector<16x128xf32>
    %c0_11 = arith.constant 0 : index
    %c0_12 = arith.constant 0 : index
    %14 = vector.load %arg6[%c0_11, %c0_12] : memref<1x128xf32, #tpu.memory_space<vmem>>, vector<1x128xf32>
    %15 = vector.broadcast %14 : vector<1x128xf32> to vector<16x128xf32>
    %16 = arith.addf %13, %15 : vector<16x128xf32>
    %cst_13 = arith.constant 0.000000e+00 : f32
    %17 = vector.broadcast %cst_13 : f32 to vector<16x128xf32>
    %18 = arith.cmpf oge, %16, %17 : vector<16x128xf32>
    %cst_14 = arith.constant 0.00999999977 : f32
    %19 = vector.broadcast %cst_14 : f32 to vector<16x128xf32>
    %20 = arith.mulf %19, %16 : vector<16x128xf32>
    %21 = arith.select %18, %16, %20 : vector<16x128xi1>, vector<16x128xf32>
    %c0_15 = arith.constant 0 : index
    %c0_16 = arith.constant 0 : index
    %22 = vector.load %arg7[%c0_15, %c0_16] : memref<128x128xf32, #tpu.memory_space<vmem>>, vector<128x128xf32>
    %cst_17 = arith.constant dense<0.000000e+00> : vector<16x128xf32>
    %23 = tpu.matmul %21, %22, %cst_17 {dimension_numbers = #tpu.dot_dimension_numbers<[1], [0], [0], [1], [0, 0, 1, 1], [], []>} : vector<16x128xf32>, vector<128x128xf32>, vector<16x128xf32> -> vector<16x128xf32>
    %c0_18 = arith.constant 0 : index
    %c0_19 = arith.constant 0 : index
    %24 = vector.load %arg8[%c0_18, %c0_19] : memref<1x128xf32, #tpu.memory_space<vmem>>, vector<1x128xf32>
    %25 = vector.broadcast %24 : vector<1x128xf32> to vector<16x128xf32>
    %26 = arith.addf %23, %25 : vector<16x128xf32>
    %cst_20 = arith.constant 0.000000e+00 : f32
    %27 = vector.broadcast %cst_20 : f32 to vector<16x128xf32>
    %28 = arith.cmpf oge, %26, %27 : vector<16x128xf32>
    %cst_21 = arith.constant 0.00999999977 : f32
    %29 = vector.broadcast %cst_21 : f32 to vector<16x128xf32>
    %30 = arith.mulf %29, %26 : vector<16x128xf32>
    %31 = arith.select %28, %26, %30 : vector<16x128xi1>, vector<16x128xf32>
    %c0_22 = arith.constant 0 : index
    %c0_23 = arith.constant 0 : index
    %32 = vector.load %arg9[%c0_22, %c0_23] : memref<128x128xf32, #tpu.memory_space<vmem>>, vector<128x128xf32>
    %cst_24 = arith.constant dense<0.000000e+00> : vector<16x128xf32>
    %33 = tpu.matmul %31, %32, %cst_24 {dimension_numbers = #tpu.dot_dimension_numbers<[1], [0], [0], [1], [0, 0, 1, 1], [], []>} : vector<16x128xf32>, vector<128x128xf32>, vector<16x128xf32> -> vector<16x128xf32>
    %c0_25 = arith.constant 0 : index
    %c0_26 = arith.constant 0 : index
    %34 = vector.load %arg10[%c0_25, %c0_26] : memref<1x128xf32, #tpu.memory_space<vmem>>, vector<1x128xf32>
    %35 = vector.broadcast %34 : vector<1x128xf32> to vector<16x128xf32>
    %36 = arith.addf %33, %35 : vector<16x128xf32>
    %c0_27 = arith.constant 0 : index
    %c0_28 = arith.constant 0 : index
    %37 = vector.load %arg11[%c0_27, %c0_28] : memref<16x128xf32, #tpu.memory_space<vmem>>, vector<16x128xf32>
    tpu.vector_store %arg11[%c0_27, %c0_28], %36 {strides = array<i32>} : memref<16x128xf32, #tpu.memory_space<vmem>>, vector<16x128xf32>,
    return
  }
  func.func @transform_0(%arg0: i32) -> (i32, i32) {
    %c0_i32 = arith.constant 0 : i32
    %c0_i32_0 = arith.constant 0 : i32
    return %arg0, %c0_i32 : i32, i32
  }
  func.func @transform_1(%arg0: i32) -> (i32, i32) {
    %c0_i32 = arith.constant 0 : i32
    %c0_i32_0 = arith.constant 0 : i32
    %c0_i32_1 = arith.constant 0 : i32
    return %c0_i32, %c0_i32_0 : i32, i32
  }
  func.func @transform_2(%arg0: i32) -> (i32, i32) {
    %c0_i32 = arith.constant 0 : i32
    %c0_i32_0 = arith.constant 0 : i32
    return %arg0, %c0_i32 : i32, i32
  }
  func.func @transform_3(%arg0: i32) -> (i32, i32) {
    %c0_i32 = arith.constant 0 : i32
    %c0_i32_0 = arith.constant 0 : i32
    %c0_i32_1 = arith.constant 0 : i32
    return %c0_i32, %c0_i32_0 : i32, i32
  }
  func.func @transform_4(%arg0: i32) -> (i32, i32) {
    %c0_i32 = arith.constant 0 : i32
    %c0_i32_0 = arith.constant 0 : i32
    %c0_i32_1 = arith.constant 0 : i32
    return %c0_i32, %c0_i32_0 : i32, i32
  }
  func.func @transform_5(%arg0: i32) -> (i32, i32) {
    %c0_i32 = arith.constant 0 : i32
    %c0_i32_0 = arith.constant 0 : i32
    %c0_i32_1 = arith.constant 0 : i32
    return %c0_i32, %c0_i32_0 : i32, i32
  }
  func.func @transform_6(%arg0: i32) -> (i32, i32) {
    %c0_i32 = arith.constant 0 : i32
    %c0_i32_0 = arith.constant 0 : i32
    %c0_i32_1 = arith.constant 0 : i32
    return %c0_i32, %c0_i32_0 : i32, i32
  }
  func.func @transform_7(%arg0: i32) -> (i32, i32) {
    %c0_i32 = arith.constant 0 : i32
    %c0_i32_0 = arith.constant 0 : i32
    %c0_i32_1 = arith.constant 0 : i32
    return %c0_i32, %c0_i32_0 : i32, i32
  }
  func.func @transform_8(%arg0: i32) -> (i32, i32) {
    %c0_i32 = arith.constant 0 : i32
    %c0_i32_0 = arith.constant 0 : i32
    %c0_i32_1 = arith.constant 0 : i32
    return %c0_i32, %c0_i32_0 : i32, i32
  }
  func.func @transform_9(%arg0: i32) -> (i32, i32) {
    %c0_i32 = arith.constant 0 : i32
    %c0_i32_0 = arith.constant 0 : i32
    %c0_i32_1 = arith.constant 0 : i32
    return %c0_i32, %c0_i32_0 : i32, i32
  }
  func.func @transform_10(%arg0: i32) -> (i32, i32) {
    %c0_i32 = arith.constant 0 : i32
    %c0_i32_0 = arith.constant 0 : i32
    return %arg0, %c0_i32 : i32, i32
  }
}

</mosaic_0001>

<bundles_post_ra>
// kernel: tpu_custom_call.1
= control target key start
LH: loop header
LB: loop body
LE: loop exit
PB: predicated region body
PF: predicated region fallthrough
CT: control target
= control target key end

     0   :  { %s2139_s0 = inlined_call_operand.vmem [shape: s32[32,1], index: 0, kind: input, shape index: {}]   ;;  %s2140_s1 = inlined_call_operand.hbm [shape: f32[16,128], index: 1, kind: input, shape index: {}]   ;;  %s2141_s2 = inlined_call_operand.vmem [shape: f32[32,128], index: 2, kind: input, shape index: {}]   ;;  %s2142_s3 = inlined_call_operand.hbm [shape: f32[128,128], index: 3, kind: input, shape index: {}]   ;;  %s2143_s4 = inlined_call_operand.hbm [shape: f32[128,128], index: 4, kind: input, shape index: {}]   ;;  %s2144_s5 = inlined_call_operand.vmem [shape: f32[1,128], index: 5, kind: input, shape index: {}]   ;;  %s2145_s6 = inlined_call_operand.hbm [shape: f32[128,128], index: 6, kind: input, shape index: {}]   ;;  %s2146_s7 = inlined_call_operand.vmem [shape: f32[1,128], index: 7, kind: input, shape index: {}]   ;;  %s2147_s8 = inlined_call_operand.hbm [shape: f32[128,128], index: 8, kind: input, shape index: {}]   ;;  %s2148_s9 = inlined_call_operand.vmem [shape: f32[1,128], index: 9, kind: input, shape index: {}]   ;;  %s2149_s10 = inlined_call_operand.hbm [shape: f32[32,128], index: 10, kind: output, shape index: {}]  }
   0x1   :  { %2159 = sst [smem:[#allocation22_spill]] %s2142_s3 }
   0x2   :  { %15 = vsyncpa [#allocation3], 0 }
   0x3   :  { %16 = vsyncpa [#allocation6], 0 }
   0x4   :  { %17 = vsyncpa [#allocation9], 0 }
   0x5   :  { %18 = vsyncpa [#allocation4], 0 }
   0x6   :  { %20 = vsyncpa [#allocation4 + $0x1], 0  ;;  %s1866_s13 = smov 0   ;;  %s1868_s14 = smov 0  }
   0x7   :  { %s1870_s15 = smov 0   ;;  %s1872_s16 = smov 0  }
   0x8 LB: > { %2160 = sst [smem:[#allocation16_spill]] %s1785_s13  ;;  %s1887_s17 = sadd.s32 4294967295, %s1797_s16   ;;  %s1797_s16 = sphi %s1872_s16, %s2184_s16   ;;  %s1793_s15 = sphi %s1870_s15, %s2186_s15   ;;  %s1789_s14 = sphi %s1868_s14, %s2188_s14   ;;  %s1785_s13 = sphi %s1866_s13, %s2187_s13  }
   0x9   : > { %2161 = sst [smem:[#allocation17_spill]] %s1793_s15  ;;  %s1097_s18 = sadd.s32 4294967294, %s1797_s16  }
   0xa   : > { %2162 = sst [smem:[#allocation18_spill]] %s1797_s16  ;;  %s1891_s19 = sadd.s32 1, %s1797_s16  }
   0xb   : > { %2163 = sst [smem:[#allocation19_spill]] %s1891_s19  ;;  %s253_s20 = sadd.s32 1, %s1793_s15 }
   0xc   : > { %s250_s21 = ssub.s32 %s1797_s16, %s1891_s19  ;;  %p263_p0 = scmp.ne.s32.totalorder %s1793_s15, %s1789_s14 }
   0xd   : > { %p251_p1 = scmp.eq.s32.totalorder %s250_s21, 0  ;;  %p264_p2 = scmp.eq.s32.totalorder %s1887_s17, 1 }
   0xe   : > { %p269_p3 = scmp.ne.s32.totalorder %s1789_s14, %s1785_s13  ;;  %p270_p4 = scmp.eq.s32.totalorder %s1097_s18, 1 }
   0xf   : > { %s1902_s22 = scalar_select %p251_p1, %s1793_s15, %s253_s20  }
  0x10   : > { %p1904_p5 = por %p264_p2, %p263_p0  ;;  %p1908_p6 = por %p270_p4, %p269_p3 }
  0x11   : > { %2164 = sst [smem:[#allocation20_spill]] %s1902_s22  ;;  %p1098_p7 = scmp.ge.s32.totalorder %s1797_s16, 1 }
  0x12   : > { %s2165_s23 = scalar_select %p1904_p5, 1, 0 }
  0x13   : > { %s2166_s24 = scalar_select %p1908_p6, 1, 0 }
  0x14   : > { %p277_p8 = scmp.lt.s32.totalorder %s1797_s16, 3  ;;  %p2151_p9 = scmp.eq.s32.totalorder %s1887_s17, 0 }
  0x15   : > { %2167 = sst [smem:[#allocation21_spill]] %s2166_s24  ;;  %s1799_s26 = smov [#allocation5]  }
  0x16   : > { %p1915_p10 = pnand %p1098_p7, %p277_p8  ;;  %s302_s27 = sshll.u32 %s1799_s26, 4  ;;  %s1921_s27 = int_to_ptr.vmem [resolvable:$true] %s302_s27 }
  0x17   : > { %s1800_s29 = smov [#allocation8]   ;;  %s1801_s11 = smov [#allocation2]  }
  0x18   : > { %s2168_s25 = scalar_select %p1915_p10, 1, 0 }
  0x19   : > { %p1508_p11 = pneg %p1915_p10  ;;  %s331_s30 = sshll.u32 %s1800_s29, 4  ;;  %s1929_s30 = int_to_ptr.vmem [resolvable:$true] %s331_s30 }
  0x1a   : > { %s1931_s12 = sshll.u32 %s1801_s11, 4  ;;  %s2170_s3 = sld [smem:[#allocation22_spill]]  ;;  %s290_s12 = int_to_ptr.vmem [resolvable:$true] %s1931_s12 }
  0x1b   : > { %p1925_p12 = pnand %p2151_p9, %p1508_p11 }
  0x1d   : > { %p1941_p0 = pneg %p1925_p12 }
  0x20   : > { %s1583_s21 = scalar_lea.hbm %s2170_s3, 2048 }
  0x21   : > { %p1584_p13 = scmp.ne.s32.totalorder %s2170_s3, %s1583_s21  ;;  %p1590_p3 = scmp.lt.u32.totalorder %s1583_s21, %s2170_s3 }
  0x23   : > { %p1586_p1 = pnand %p1941_p0, %p1584_p13 }
  0x25   : > { %p1587_p2 = pneg %p1586_p1 }
  0x27   : > { %p1592_p4 = pnand %p1590_p3, %p1587_p2 }
  0x29   : > { %1595 = shalt.err (!%p1592_p4)
}
  0x2a   : > { %s1596_s22 = scalar_lea.vmem %s1921_s27, 2048  ;;  %p1604_p9 = scmp.lt.s32.totalorder %s1921_s27, %s1921_s27 }
  0x2b   : > { %p1597_p7 = scmp.ne.s32.totalorder %s1921_s27, %s1596_s22  ;;  %p1605_p6 = scmp.lt.s32.totalorder %s1596_s22, %s1596_s22 }
  0x2d   : > { %p1599_p8 = pnand %p1597_p7, %p1941_p0  ;;  %p1606_p13 = por %p1605_p6, %p1604_p9 }
  0x2f   : > { %p1600_p11 = pneg %p1599_p8 }
  0x31   : > { %p1607_p1 = pnand %p1606_p13, %p1600_p11 }
  0x33   : > { %1610 = shalt.err (!%p1607_p1)
}
  0x34   : > { %s1802_s18 = smov 128   ;;  %s1803_s20 = smov 8  }
  0x35   : > { %1514 = dma.hbm_to_vmem [thread:$0]  (!%p1925_p12), %s2170_s3, 2048, %s1921_s27, [#allocation6], %s1802_s18, %s1802_s18, %s1803_s20  }
  0x36   : > { %s1611_s22 = scalar_lea.hbm %s2145_s6, 2048 }
  0x37   : > { %p1612_p6 = scmp.ne.s32.totalorder %s2145_s6, %s1611_s22  ;;  %p1618_p3 = scmp.lt.u32.totalorder %s1611_s22, %s2145_s6 }
  0x39   : > { %p1614_p9 = pnand %p1612_p6, %p1941_p0 }
  0x3b   : > { %p1615_p2 = pneg %p1614_p9 }
  0x3d   : > { %p1620_p4 = pnand %p1618_p3, %p1615_p2 }
  0x3f   : > { %1623 = shalt.err (!%p1620_p4)
}
  0x40   : > { %s1624_s27 = scalar_lea.vmem %s1929_s30, 2048  ;;  %p1632_p13 = scmp.lt.s32.totalorder %s1929_s30, %s1929_s30 }
  0x41   : > { %p1625_p7 = scmp.ne.s32.totalorder %s1929_s30, %s1624_s27  ;;  %p1633_p1 = scmp.lt.s32.totalorder %s1624_s27, %s1624_s27 }
  0x43   : > { %p1627_p8 = pnand %p1625_p7, %p1941_p0  ;;  %p1634_p6 = por %p1633_p1, %p1632_p13 }
  0x45   : > { %p1628_p11 = pneg %p1627_p8 }
  0x47   : > { %p1635_p9 = pnand %p1634_p6, %p1628_p11 }
  0x49   : > { %1638 = shalt.err (!%p1635_p9)
}
  0x4a   : > { %1520 = dma.hbm_to_vmem [thread:$0]  (!%p1925_p12), %s2145_s6, 2048, %s1929_s30, [#allocation9], %s1802_s18, %s1802_s18, %s1803_s20  }
  0x4b   : > { %s1639_s21 = scalar_lea.hbm %s2140_s1, 256 }
  0x4c   : > { %p1640_p2 = scmp.ne.s32.totalorder %s2140_s1, %s1639_s21  ;;  %p1646_p7 = scmp.lt.u32.totalorder %s1639_s21, %s2140_s1 }
  0x4e   : > { %p1642_p3 = pnand %p1640_p2, %p1941_p0 }
  0x50   : > { %p1643_p4 = pneg %p1642_p3 }
  0x52   : > { %p1648_p8 = pnand %p1646_p7, %p1643_p4 }
  0x54   : > { %1651 = shalt.err (!%p1648_p8)
}
  0x55   : > { %s1652_s27 = scalar_lea.vmem %s290_s12, 256  ;;  %p1660_p6 = scmp.lt.s32.totalorder %s290_s12, %s290_s12 }
  0x56   : > { %p1653_p11 = scmp.ne.s32.totalorder %s290_s12, %s1652_s27  ;;  %p1661_p9 = scmp.lt.s32.totalorder %s1652_s27, %s1652_s27 }
  0x58   : > { %p1655_p13 = pnand %p1653_p11, %p1941_p0  ;;  %p1662_p5 = por %p1661_p9, %p1660_p6 }
  0x5a   : > { %p1656_p1 = pneg %p1655_p13 }
  0x5c   : > { %p1663_p10 = pnand %p1662_p5, %p1656_p1 }
  0x5e   : > { %1666 = shalt.err (!%p1663_p10)
}
  0x5f   : > { %1511 = dma.hbm_to_vmem [thread:$0]  (!%p1925_p12), %s2140_s1, 256, %s290_s12, [#allocation3], %s1802_s18, %s1802_s18, %s1803_s20  }
  0x60   : > { %s1804_s16 = smov [#allocation7]   ;;  %s1805_s24 = smov [#allocation10]  }
  0x61   : > { %s315_s19 = sshll.u32 %s1804_s16, 4  ;;  %s347_s21 = sshll.u32 %s1805_s24, 4  ;;  %s316_s19 = int_to_ptr.vmem [resolvable:$true] %s315_s19  ;;  %s348_s21 = int_to_ptr.vmem [resolvable:$true] %s347_s21 }
  0x62   : > { %s1667_s11 = scalar_lea.hbm %s2143_s4, 2048 }
  0x63   : > { %p1668_p5 = scmp.ne.s32.totalorder %s2143_s4, %s1667_s11  ;;  %p1674_p3 = scmp.lt.u32.totalorder %s1667_s11, %s2143_s4 }
  0x65   : > { %p1670_p10 = pnand %p1668_p5, %p1941_p0 }
  0x67   : > { %p1671_p2 = pneg %p1670_p10 }
  0x69   : > { %p1676_p4 = pnand %p1674_p3, %p1671_p2 }
  0x6b   : > { %1679 = shalt.err (!%p1676_p4)
}
  0x6c   : > { %s1680_s12 = scalar_lea.vmem %s316_s19, 2048  ;;  %p1688_p13 = scmp.lt.s32.totalorder %s316_s19, %s316_s19 }
  0x6d   : > { %p1681_p7 = scmp.ne.s32.totalorder %s316_s19, %s1680_s12  ;;  %p1689_p1 = scmp.lt.s32.totalorder %s1680_s12, %s1680_s12 }
  0x6f   : > { %p1683_p8 = pnand %p1681_p7, %p1941_p0  ;;  %p1690_p6 = por %p1689_p1, %p1688_p13 }
  0x71   : > { %p1684_p11 = pneg %p1683_p8 }
  0x73   : > { %p1691_p9 = pnand %p1690_p6, %p1684_p11 }
  0x75   : > { %1694 = shalt.err (!%p1691_p9)
}
  0x76   : > { %1517 = dma.hbm_to_vmem [thread:$0]  (!%p1925_p12), %s2143_s4, 2048, %s316_s19, [#allocation6], %s1802_s18, %s1802_s18, %s1803_s20  }
  0x77   : > { %s1695_s26 = scalar_lea.hbm %s2147_s8, 2048 }
  0x78   : > { %p1696_p5 = scmp.ne.s32.totalorder %s2147_s8, %s1695_s26  ;;  %p1702_p3 = scmp.lt.u32.totalorder %s1695_s26, %s2147_s8 }
  0x7a   : > { %p1698_p10 = pnand %p1696_p5, %p1941_p0 }
  0x7c   : > { %p1699_p2 = pneg %p1698_p10 }
  0x7e   : > { %p1704_p4 = pnand %p1702_p3, %p1699_p2 }
  0x80   : > { %1707 = shalt.err (!%p1704_p4)
}
  0x81   : > { %s1708_s30 = scalar_lea.vmem %s348_s21, 2048  ;;  %p1716_p13 = scmp.lt.s32.totalorder %s348_s21, %s348_s21 }
  0x82   : > { %p1709_p7 = scmp.ne.s32.totalorder %s348_s21, %s1708_s30  ;;  %p1717_p1 = scmp.lt.s32.totalorder %s1708_s30, %s1708_s30 }
  0x84   : > { %p1711_p8 = pnand %p1709_p7, %p1941_p0  ;;  %p1718_p6 = por %p1717_p1, %p1716_p13 }
  0x86   : > { %p1712_p11 = pneg %p1711_p8 }
  0x88   : > { %p1719_p9 = pnand %p1718_p6, %p1712_p11 }
  0x8a   : > { %1722 = shalt.err (!%p1719_p9)
}
  0x8b   : > { %1523 = dma.hbm_to_vmem [thread:$0]  (!%p1925_p12), %s2147_s8, 2048, %s348_s21, [#allocation9], %s1802_s18, %s1802_s18, %s1803_s20  }
  0x8c   : > { %p2172_p5 = scmp.ne.s32.totalorder %s2168_s25, 0 }
  0x8d   : > { %p2173_p0 = scmp.eq.s32.totalorder (!%p2172_p5), %s1887_s17, 0 }
  0x8e   : > { %384 = sbr.rel (%p2172_p5) target bundleno = 1179 (0x49b), region = 60 }
  0x95   : > { %1768 = dma.done.wait (%p2173_p0), [#allocation3], 256   ;;  %p2174_p10 = pmov %p2173_p0 }
  0x96   : > { %p2175_p2 = pmov %p2173_p0 }
  0x97   : > { %1770 = vsyncadd (%p2174_p10), [#allocation3], 4294967040 }
  0x98   : > { %1772 = dma.done.wait (%p2175_p2), [#allocation6], 4096   ;;  %p2176_p3 = pmov %p2173_p0 }
  0x99   : > { %p2177_p4 = pmov %p2173_p0 }
  0x9a   : > { %1774 = vsyncadd (%p2176_p3), [#allocation6], 4294963200 }
  0x9b   : > { %1776 = dma.done.wait (%p2177_p4), [#allocation9], 4096   ;;  %p2178_p12 = pmov %p2173_p0 }
  0x9c   : > { %s1112_s15 = sshll.u32 %s1887_s17, 1  ;;  %v1806_v0 = vmov 0   ;;  %v472_v2 = vld [vmem:[#allocation2] sm:$0xff]  ;;  %v473_v3 = vld [vmem:[#allocation2 + $0x8] sm:$0xff]  ;;  %v574_v6 = vld [vmem:[#allocation7] sm:$0xff]  ;;  %v456_v56 = vlaneseq  ;;  %vm474_vm0 = vcmask 130048  }
  0x9d   : > { %1778 = vsyncadd (%p2178_p12), [#allocation9], 4294963200  ;;  %1582 = vset.pattern.permute.xlu0 %v1806_v0  ;;  %p444_p7 = scmp.lt.s32.totalorder %s1112_s15, 3  ;;  %v1352_v5 = vpack.c.bf16 %v473_v3, %v472_v2  ;;  %v575_v7 = vld [vmem:[#allocation7 + $0x8] sm:$0xff]  ;;  %v576_v8 = vld [vmem:[#allocation7 + $0x10] sm:$0xff]  ;;  %v1807_v59 = vmov 0.0  }
  0x9e   : > { %v1356_v9 = vpack.c.bf16 %v575_v7, %v574_v6  ;;  %v577_v10 = vld [vmem:[#allocation7 + $0x18] sm:$0xff]  ;;  %v578_v12 = vld [vmem:[#allocation7 + $0x20] sm:$0xff]  ;;  %v579_v13 = vld [vmem:[#allocation7 + $0x28] sm:$0xff]  ;;  %v457_v57 = vand.u32 127, %v456_v56  ;;  %s440_s11 = sand.u32 1, %s1789_s14   ;;  %p2179_p11 = scmp.ne.s32.totalorder %s2165_s23, 0 }
  0x9f   : > { %s2190_s15 = smov (!%p444_p7, %s1112_s15), 3  ;;  %1353 = vmatprep.subr.bf16.mxu0 %v1352_v5  ;;  %v1360_v11 = vpack.c.bf16 %v577_v10, %v576_v8  ;;  %v1364_v14 = vpack.c.bf16 %v579_v13, %v578_v12  ;;  %v580_v16 = vld [vmem:[#allocation7 + $0x30] sm:$0xff]  ;;  %v581_v17 = vld [vmem:[#allocation7 + $0x38] sm:$0xff]  ;;  %v582_v19 = vld [vmem:[#allocation7 + $0x40] sm:$0xff]  ;;  %s1111_s22 = sshll.u32 %s440_s11, 4 }
  0xa0   : > { %s1113_s25 = sshll.u32 %s2190_s15, 3  ;;  %1355 = vmatpush3.bf16.msra.mxu0 %v1352_v5  ;;  %1357 = vmatprep.subr.bf16.mxu1 %v1356_v9  ;;  %v1368_v18 = vpack.c.bf16 %v581_v17, %v580_v16  ;;  %v583_v20 = vld [vmem:[#allocation7 + $0x48] sm:$0xff]  ;;  %v584_v22 = vld [vmem:[#allocation7 + $0x50] sm:$0xff]  ;;  %v585_v23 = vld [vmem:[#allocation7 + $0x58] sm:$0xff]  ;;  %s442_s19 = scalar_lea.vmem [#allocation11], %s1111_s22 }
  0xa1   : > { %s447_s20 = scalar_lea.vmem %s2139_s0, %s1113_s25  ;;  %s2076_s13 = scalar_lea.vmem %s2141_s2, %s1113_s25  ;;  %1359 = vmatpush3.bf16.msra.mxu1 %v1356_v9  ;;  %v1372_v21 = vpack.c.bf16 %v583_v20, %v582_v19  ;;  %v1376_v24 = vpack.c.bf16 %v585_v23, %v584_v22  ;;  %v586_v25 = vld [vmem:[#allocation7 + $0x60] sm:$0xff]  ;;  %v587_v26 = vld [vmem:[#allocation7 + $0x68] sm:$0xff]  ;;  %v588_v28 = vld [vmem:[#allocation7 + $0x70] sm:$0xff] }
  0xa2   : > { %v458_v1 = vld [vmem:[%s447_s20] sm:$0xff]  ;;  %v459_v4 = vld [vmem:[%s447_s20 + $0x8] sm:$0xff]  ;;  %1361 = vmatprep.subr.bf16.mxu1 %v1360_v11  ;;  %v1380_v27 = vpack.c.bf16 %v587_v26, %v586_v25  ;;  %v557_v32 = vld [vmem:[#allocation5 + $0x8] sm:$0xff]  ;;  %s973_s12 = sshll.u32 %s442_s19, 4  ;;  %s1128_s15 = sshll.u32 %s1887_s17, 8  ;;  %s2091_s12 = int_to_ptr.vmem [resolvable:$true] %s973_s12 }
  0xa3   : > { %461 = vperm.xlu0 %1582, %v458_v1   ;;  %v572_v15 = vld [vmem:[%s2076_s13] sm:$0xff]  ;;  %v556_v31 = vld [vmem:[#allocation5] sm:$0xff]  ;;  %v558_v34 = vld [vmem:[#allocation5 + $0x10] sm:$0xff]  ;;  %s2096_s18 = scalar_lea.hbm %s2149_s10, %s1128_s15  ;;  %s2098_s20 = scalar_lea.sflag [#allocation4], %s440_s11 }
  0xa4   : > { %1244 = vmatprep.mubr.f32.mxu1 %v572_v15  ;;  %v589_v29 = vld [vmem:[#allocation7 + $0x78] sm:$0xff]  ;;  %v1388_v33 = vpack.c.bf16 %v557_v32, %v556_v31  ;;  %v573_v36 = vld [vmem:[%s2076_s13 + $0x8] sm:$0xff]  ;;  %v561_v39 = vld [vmem:[#allocation5 + $0x28] sm:$0xff]  ;;  %s1723_s21 = scalar_lea.vmem %s2091_s12, 256  ;;  %s1808_s17 = smov [#allocation11]  }
  0xa5   : > { %1363 = vmatpush3.bf16.msra.mxu1 %v1360_v11  ;;  %v1384_v30 = vpack.c.bf16 %v589_v29, %v588_v28  ;;  %v559_v35 = vld [vmem:[#allocation5 + $0x18] sm:$0xff]  ;;  %v560_v38 = vld [vmem:[#allocation5 + $0x20] sm:$0xff]  ;;  %v562_v41 = vld [vmem:[#allocation5 + $0x30] sm:$0xff]  ;;  %p1724_p8 = scmp.ne.s32.totalorder %s2091_s12, %s1723_s21  ;;  %s1727_s3 = sshll.u32 %s1808_s17, 4  ;;  %s1728_s3 = int_to_ptr.vmem [resolvable:$false] %s1727_s3 }
  0xa6   : > { %1365 = vmatprep.subr.bf16.mxu1 %v1364_v14  ;;  %v1392_v37 = vpack.c.bf16 %v559_v35, %v558_v34  ;;  %v1396_v40 = vpack.c.bf16 %v561_v39, %v560_v38  ;;  %v563_v42 = vld [vmem:[#allocation5 + $0x38] sm:$0xff]  ;;  %v564_v44 = vld [vmem:[#allocation5 + $0x40] sm:$0xff]  ;;  %v565_v45 = vld [vmem:[#allocation5 + $0x48] sm:$0xff]  ;;  %s1729_s13 = scalar_lea.vmem %s1728_s3, 512  ;;  %p1730_p6 = scmp.lt.s32.totalorder %s2091_s12, %s1728_s3 }
  0xa7   : > { %464 = vperm.xlu0 %1582, %v459_v4   ;;  %v1400_v43 = vpack.c.bf16 %v563_v42, %v562_v41  ;;  %v1404_v46 = vpack.c.bf16 %v565_v45, %v564_v44  ;;  %v566_v47 = vld [vmem:[#allocation5 + $0x50] sm:$0xff]  ;;  %v567_v48 = vld [vmem:[#allocation5 + $0x58] sm:$0xff]  ;;  %v568_v50 = vld [vmem:[#allocation5 + $0x60] sm:$0xff]  ;;  %p1725_p13 = pnand %p1724_p8, %p2179_p11  ;;  %p1731_p9 = scmp.lt.s32.totalorder %s1729_s13, %s1723_s21 }
  0xa8   : > { %v1408_v49 = vpack.c.bf16 %v567_v48, %v566_v47  ;;  %v569_v51 = vld [vmem:[#allocation5 + $0x68] sm:$0xff]  ;;  %v570_v53 = vld [vmem:[#allocation5 + $0x70] sm:$0xff]  ;;  %v571_v54 = vld [vmem:[#allocation5 + $0x78] sm:$0xff] }
  0xa9   : > { %1367 = vmatpush3.bf16.msra.mxu1 %v1364_v14  ;;  %v1412_v52 = vpack.c.bf16 %v569_v51, %v568_v50  ;;  %v1416_v55 = vpack.c.bf16 %v571_v54, %v570_v53  ;;  %v755_v63 = vld [vmem:[#allocation8] sm:$0xff]  ;;  %v756_v0 = vld [vmem:[#allocation8 + $0x8] sm:$0xff]  ;;  %v757_v1 = vld [vmem:[#allocation8 + $0x10] sm:$0xff]  ;;  %p1726_p1 = pneg %p1725_p13  ;;  %p1732_p5 = por %p1731_p9, %p1730_p6 }
  0xaa   : > { %1369 = vmatprep.subr.bf16.mxu1 %v1368_v18  ;;  %v1420_v2 = vpack.c.bf16 %v756_v0, %v755_v63  ;;  %v758_v3 = vld [vmem:[#allocation8 + $0x18] sm:$0xff]  ;;  %v759_v5 = vld [vmem:[#allocation8 + $0x20] sm:$0xff]  ;;  %v760_v6 = vld [vmem:[#allocation8 + $0x28] sm:$0xff] }
  0xab   : > { %v1424_v4 = vpack.c.bf16 %v758_v3, %v757_v1  ;;  %v1428_v7 = vpack.c.bf16 %v760_v6, %v759_v5  ;;  %v761_v8 = vld [vmem:[#allocation8 + $0x30] sm:$0xff]  ;;  %v762_v9 = vld [vmem:[#allocation8 + $0x38] sm:$0xff]  ;;  %v763_v11 = vld [vmem:[#allocation8 + $0x40] sm:$0xff]  ;;  %p1733_p0 = pnand %p1732_p5, %p1726_p1 }
  0xac   : > { %1421 = vmatprep.subr.bf16.mxu0 %v1420_v2  ;;  %v1432_v10 = vpack.c.bf16 %v762_v9, %v761_v8  ;;  %v764_v12 = vld [vmem:[#allocation8 + $0x48] sm:$0xff]  ;;  %v765_v14 = vld [vmem:[#allocation8 + $0x50] sm:$0xff]  ;;  %v766_v15 = vld [vmem:[#allocation8 + $0x58] sm:$0xff] }
  0xad   : > { %1371 = vmatpush3.bf16.msra.mxu1 %v1368_v18  ;;  %v1436_v13 = vpack.c.bf16 %v764_v12, %v763_v11  ;;  %v1440_v16 = vpack.c.bf16 %v766_v15, %v765_v14  ;;  %v767_v19 = vld [vmem:[#allocation8 + $0x60] sm:$0xff]  ;;  %v768_v20 = vld [vmem:[#allocation8 + $0x68] sm:$0xff]  ;;  %v769_v22 = vld [vmem:[#allocation8 + $0x70] sm:$0xff] }
  0xae   : > { %1373 = vmatprep.subr.bf16.mxu1 %v1372_v21  ;;  %v770_v23 = vld [vmem:[#allocation8 + $0x78] sm:$0xff]  ;;  %v859_v25 = vld [vmem:[#allocation10] sm:$0xff]  ;;  %v860_v26 = vld [vmem:[#allocation10 + $0x8] sm:$0xff] }
  0xaf   : > { %v1120_v28 = vld [vmem:[%s2144_s5] ss:$0 sm:$0xff]  ;;  %v861_v34 = vld [vmem:[#allocation10 + $0x10] sm:$0xff]  ;;  %v864_v41 = vld [vmem:[#allocation10 + $0x28] sm:$0xff] }
  0xb0   : > { %v862_v35 = vld [vmem:[#allocation10 + $0x18] sm:$0xff]  ;;  %v868_v47 = vld [vmem:[#allocation10 + $0x48] sm:$0xff] }
  0xb1   : > { %1375 = vmatpush3.bf16.msra.mxu1 %v1372_v21  ;;  %v1444_v21 = vpack.c.bf16 %v768_v20, %v767_v19  ;;  %v1456_v38 = vpack.c.bf16 %v862_v35, %v861_v34  ;;  %v866_v44 = vld [vmem:[#allocation10 + $0x38] sm:$0xff]  ;;  %v872_v53 = vld [vmem:[#allocation10 + $0x68] sm:$0xff] }
  0xb2   : > { %1377 = vmatprep.subr.bf16.mxu1 %v1376_v24  ;;  %v870_v50 = vld [vmem:[#allocation10 + $0x58] sm:$0xff] }
  0xb3   : > { %v874_v56 = vld [vmem:[#allocation10 + $0x78] sm:$0xff] }
  0xb4   : > { %v1122_v3 = vld [vmem:[%s2148_s9] ss:$0 sm:$0xff] }
  0xb5   : > { %1379 = vmatpush3.bf16.msra.mxu1 %v1376_v24  ;;  %v1448_v24 = vpack.c.bf16 %v770_v23, %v769_v22 }
  0xb6   : > { %1381 = vmatprep.subr.bf16.mxu1 %v1380_v27 }
  0xb9   : > { %1383 = vmatpush3.bf16.msra.mxu1 %v1380_v27  ;;  %v1452_v27 = vpack.c.bf16 %v860_v26, %v859_v25 }
  0xba   : > { %1385 = vmatprep.subr.bf16.mxu1 %v1384_v30 }
  0xbd   : > { %1387 = vmatpush3.bf16.msra.mxu1 %v1384_v30 }
  0xbe   : > { %1389 = vmatprep.subr.bf16.mxu1 %v1388_v33 }
  0xc0   : > { %1245 = vmatmul.mubr.f32.vlgmr.msra.gmra.mrb[0].mxu1 %v573_v36 }
  0xc1   : > { %1391 = vmatpush3.bf16.msra.mxu1 %v1388_v33 }
  0xc2   : > { %1393 = vmatprep.subr.bf16.mxu1 %v1392_v37 }
  0xc5   : > { %1395 = vmatpush3.bf16.msra.mxu1 %v1392_v37 }
  0xc6   : > { %1397 = vmatprep.subr.bf16.mxu1 %v1396_v40 }
  0xc9   : > { %1399 = vmatpush3.bf16.msra.mxu1 %v1396_v40  ;;  %v863_v40 = vld [vmem:[#allocation10 + $0x20] sm:$0xff] }
  0xca   : > { %1401 = vmatprep.subr.bf16.mxu1 %v1400_v43  ;;  %v1460_v42 = vpack.c.bf16 %v864_v41, %v863_v40 }
  0xcd   : > { %1403 = vmatpush3.bf16.msra.mxu1 %v1400_v43  ;;  %v865_v43 = vld [vmem:[#allocation10 + $0x30] sm:$0xff] }
  0xce   : > { %1405 = vmatprep.subr.bf16.mxu1 %v1404_v46  ;;  %v1464_v45 = vpack.c.bf16 %v866_v44, %v865_v43 }
  0xd1   : > { %1407 = vmatpush3.bf16.msra.mxu1 %v1404_v46  ;;  %v867_v46 = vld [vmem:[#allocation10 + $0x40] sm:$0xff] }
  0xd2   : > { %1409 = vmatprep.subr.bf16.mxu1 %v1408_v49  ;;  %v1468_v48 = vpack.c.bf16 %v868_v47, %v867_v46 }
  0xd5   : > { %1411 = vmatpush3.bf16.msra.mxu1 %v1408_v49  ;;  %v869_v49 = vld [vmem:[#allocation10 + $0x50] sm:$0xff] }
  0xd6   : > { %1413 = vmatprep.subr.bf16.mxu1 %v1412_v52  ;;  %v1472_v51 = vpack.c.bf16 %v870_v50, %v869_v49 }
  0xd9   : > { %1415 = vmatpush3.bf16.msra.mxu1 %v1412_v52  ;;  %v871_v52 = vld [vmem:[#allocation10 + $0x60] sm:$0xff] }
  0xda   : > { %1417 = vmatprep.subr.bf16.mxu1 %v1416_v55  ;;  %v1476_v54 = vpack.c.bf16 %v872_v53, %v871_v52 }
  0xdd   : > { %1419 = vmatpush3.bf16.msra.mxu1 %v1416_v55  ;;  %v873_v55 = vld [vmem:[#allocation10 + $0x70] sm:$0xff] }
 0x122   : > { %v462_v58 = vpop.permute.xlu0 %461 }
 0x123   : > { %vm466_vm1 = vcmp.eq.s32.totalorder %v457_v57, %v462_v58  ;;  %v1121_v58 = vld [vmem:[%s2146_s7] ss:$0 sm:$0xff] }
 0x124   : > { %v1116_v60 = vsel %vm466_vm1, 1.0, %v1807_v59 }
 0x125   : > { %1209 = vmatprep.mubr.msk.f32.mxu0 %vm474_vm0, %v1116_v60 }
 0x126   : > { %v465_v61 = vpop.permute.xlu0 %464 }
 0x127   : > { %vm467_vm2 = vcmp.eq.s32.totalorder %v457_v57, %v465_v61  ;;  %v1480_v57 = vpack.c.bf16 %v874_v56, %v873_v55 }
 0x128   : > { %v1117_v62 = vsel %vm467_vm2, 1.0, %v1807_v59 }
 0x129   : > { %1210 = vmatmul.mubr.msk.f32.vlgmr.msra.gmra.mrb[0].mxu0 %vm474_vm0, %v1117_v62 }
 0x12a   : > { %1423 = vmatpush3.bf16.msra.mxu0 %v1420_v2 }
 0x12b   : > { %1425 = vmatprep.subr.bf16.mxu0 %v1424_v4 }
 0x12e   : > { %1427 = vmatpush3.bf16.msra.mxu0 %v1424_v4 }
 0x12f   : > { %1429 = vmatprep.subr.bf16.mxu0 %v1428_v7 }
 0x132   : > { %1431 = vmatpush3.bf16.msra.mxu0 %v1428_v7 }
 0x133   : > { %1433 = vmatprep.subr.bf16.mxu0 %v1432_v10 }
 0x136   : > { %1435 = vmatpush3.bf16.msra.mxu0 %v1432_v10 }
 0x137   : > { %1437 = vmatprep.subr.bf16.mxu0 %v1436_v13 }
 0x13a   : > { %1439 = vmatpush3.bf16.msra.mxu0 %v1436_v13 }
 0x13b   : > { %1441 = vmatprep.subr.bf16.mxu0 %v1440_v16 }
 0x13e   : > { %1443 = vmatpush3.bf16.msra.mxu0 %v1440_v16 }
 0x13f   : > { %1445 = vmatprep.subr.bf16.mxu0 %v1444_v21 }
 0x142   : > { %1447 = vmatpush3.bf16.msra.mxu0 %v1444_v21 }
 0x143   : > { %1449 = vmatprep.subr.bf16.mxu0 %v1448_v24 }
 0x146   : > { %1451 = vmatpush3.bf16.msra.mxu0 %v1448_v24 }
 0x147   : > { %1453 = vmatprep.subr.bf16.mxu0 %v1452_v27 }
 0x1fc   : > { %v1211_v17 = vpop.f32.mrb[0].mxu0 }
 0x1fd   : > { %v547_v18 = vpop.f32.mrb[1].mxu0 }
 0x1fe   : > { %1279 = vmatprep.mubr.f32.mxu1 %v547_v18 }
 0x1ff   : > { %1280 = vmatmul.mubr.f32.vlgmr.msra.gmra.mrb[0].mxu1 %v1211_v17 }
 0x2d2   : > { %v1281_v29 = vpop.f32.mrb[0].mxu1 }
 0x2d3   : > { %v748_v30 = vadd.f32 %v1281_v29, %v1120_v28  ;;  %v731_v31 = vpop.f32.mrb[1].mxu1 }
 0x2d4   : > { %v747_v32 = vadd.f32 %v1120_v28, %v731_v31 }
 0x2d5   : > { %v752_v33 = vmul.f32 0.01, %v748_v30  ;;  %vm750_vm3 = vcmp.ge.f32.partialorder %v748_v30, 0.0 }
 0x2d6   : > { %v751_v36 = vmul.f32 0.01, %v747_v32  ;;  %vm749_vm4 = vcmp.ge.f32.partialorder %v747_v32, 0.0 }
 0x2d7   : > { %v754_v39 = vsel %vm750_vm3, %v748_v30, %v752_v33 }
 0x2d8   : > { %v753_v37 = vsel %vm749_vm4, %v747_v32, %v751_v36 }
 0x2d9   : > { %1314 = vmatprep.mubr.f32.mxu0 %v753_v37 }
 0x2da   : > { %1315 = vmatmul.mubr.f32.vlgmr.msra.gmra.mrb[2].mxu0 %v754_v39 }
 0x2db   : > { %1455 = vmatpush3.bf16.msra.mxu0 %v1452_v27 }
 0x2dc   : > { %1457 = vmatprep.subr.bf16.mxu0 %v1456_v38 }
 0x2df   : > { %1459 = vmatpush3.bf16.msra.mxu0 %v1456_v38 }
 0x2e0   : > { %1461 = vmatprep.subr.bf16.mxu0 %v1460_v42 }
 0x2e3   : > { %1463 = vmatpush3.bf16.msra.mxu0 %v1460_v42 }
 0x2e4   : > { %1465 = vmatprep.subr.bf16.mxu0 %v1464_v45 }
 0x2e7   : > { %1467 = vmatpush3.bf16.msra.mxu0 %v1464_v45 }
 0x2e8   : > { %1469 = vmatprep.subr.bf16.mxu0 %v1468_v48 }
 0x2eb   : > { %1471 = vmatpush3.bf16.msra.mxu0 %v1468_v48 }
 0x2ec   : > { %1473 = vmatprep.subr.bf16.mxu0 %v1472_v51 }
 0x2ef   : > { %1475 = vmatpush3.bf16.msra.mxu0 %v1472_v51 }
 0x2f0   : > { %1477 = vmatprep.subr.bf16.mxu0 %v1476_v54 }
 0x2f3   : > { %1479 = vmatpush3.bf16.msra.mxu0 %v1476_v54 }
 0x2f4   : > { %1481 = vmatprep.subr.bf16.mxu0 %v1480_v57 }
 0x2f7   : > { %1483 = vmatpush3.bf16.msra.mxu0 %v1480_v57 }
 0x3ad   : > { %v1316_v59 = vpop.f32.mrb[2].mxu0 }
 0x3ae   : > { %v850_v60 = vadd.f32 %v1316_v59, %v1121_v58  ;;  %v844_v61 = vpop.f32.mrb[3].mxu0 }
 0x3af   : > { %v845_v62 = vadd.f32 %v1121_v58, %v844_v61 }
 0x3b0   : > { %v856_v63 = vmul.f32 0.01, %v850_v60  ;;  %vm854_vm5 = vcmp.ge.f32.partialorder %v850_v60, 0.0 }
 0x3b1   : > { %v855_v0 = vmul.f32 0.01, %v845_v62  ;;  %vm853_vm6 = vcmp.ge.f32.partialorder %v845_v62, 0.0 }
 0x3b2   : > { %v858_v2 = vsel %vm854_vm5, %v850_v60, %v856_v63 }
 0x3b3   : > { %v857_v1 = vsel %vm853_vm6, %v845_v62, %v855_v0 }
 0x3b4   : > { %1349 = vmatprep.mubr.f32.mxu0 %v857_v1 }
 0x3b5   : > { %1350 = vmatmul.mubr.f32.vlgmr.msra.gmra.mrb[4].mxu0 %v858_v2 }
 0x488   : > { %v1351_v4 = vpop.f32.mrb[4].mxu0 }
 0x489   : > { %v954_v5 = vadd.f32 %v1351_v4, %v1122_v3  ;;  %v948_v6 = vpop.f32.mrb[5].mxu0 }
 0x48a   : > { %v949_v7 = vadd.f32 %v1122_v3, %v948_v6 }
 0x48b   : > { %958 = vst [vmem:[%s442_s19 + $0x8] sm:$0xff] %v954_v5 }
 0x48c   : > { %957 = vst [vmem:[%s442_s19] sm:$0xff] %v949_v7 }
 0x48d   : > { %1736 = shalt.err (!%p1733_p0)
}
 0x48e   : > { %s1737_s16 = scalar_lea.hbm %s2096_s18, 256  ;;  %s1741_s29 = scalar_lea.hbm %s2149_s10, 512 }
 0x48f   : > { %p1738_p10 = scmp.ne.s32.totalorder %s2096_s18, %s1737_s16  ;;  %p1742_p4 = scmp.lt.u32.totalorder %s2096_s18, %s2149_s10 }
 0x490   : > { %p1743_p12 = scmp.lt.u32.totalorder %s1741_s29, %s1737_s16  ;;  %p1745_p8 = scmp.lt.u32.totalorder %s1737_s16, %s2096_s18 }
 0x491   : > { %p1739_p2 = pnand %p1738_p10, %p2179_p11 }
 0x492   : > { %p1744_p7 = por %p1743_p12, %p1742_p4 }
 0x493   : > { %p1740_p3 = pneg %p1739_p2 }
 0x494   : > { %p1746_p13 = por %p1745_p8, %p1744_p7 }
 0x496   : > { %p1747_p1 = pnand %p1746_p13, %p1740_p3 }
 0x498   : > { %1750 = shalt.err (!%p1747_p1)
}
 0x499   : > { %s1809_s27 = smov 128   ;;  %s1810_s30 = smov 8  }
 0x49a   : > { %1506 = dma.vmem_to_hbm [thread:$0]  (%p2179_p11), %s2091_s12, 256, %s2096_s18, %s2098_s20, %s1809_s27, %s1809_s27, %s1810_s30  }
 0x49b PF: > { %s2180_s19 = sld [smem:[#allocation18_spill]]  ;;  %s2181_s15 = sld [smem:[#allocation16_spill]] }
 0x49c   : > { %s2182_s25 = sld [smem:[#allocation21_spill]] }
 0x4a1   : > { %p1538_p6 = scmp.ge.s32.totalorder %s2180_s19, 2  ;;  %s988_s28 = sand.u32 1, %s2181_s15  }
 0x4a2   : > { %p2183_p9 = scmp.ne.s32.totalorder %s2182_s25, 0  ;;  %s989_s21 = scalar_lea.sflag [#allocation4], %s988_s28 }
 0x4a4   : > { %p1525_p5 = pnand %p1538_p6, %p2183_p9 }
 0x4a6   : > { %1780 = dma.done.wait (!%p1525_p5), %s989_s21, 256  }
 0x4a7   : > { %1782 = vsyncadd (!%p1525_p5), %s989_s21, 4294967040  ;;  %s2184_s16 = sld [smem:[#allocation19_spill]]  ;;  %s2185_s17 = sld [smem:[#allocation17_spill]] }
 0x4a8   : > { %s2186_s15 = sld [smem:[#allocation20_spill]]  ;;  %s2187_s13 = smov %s1789_s14 }
 0x4ad   : > { %p23_p0 = scmp.ge.s32.totalorder %s2184_s16, 4   ;;  %s2188_s14 = smov %s2185_s17 }
 0x4af   :  { %25 = sbr.rel (!%p23_p0) target bundleno = 8 (0x8), region = 119 }
 0x4b6   :  { %994 = vsyncpa [#allocation3], 1 }
 0x4b7   :  { %996 = vsyncpa [#allocation3 + $0x1], 1 }
 0x4b8   :  { %997 = vsyncpa [#allocation6], 1 }
 0x4b9   :  { %998 = vsyncpa [#allocation9], 1 }
 0x4ba   :  { %999 = vsyncpa [#allocation4], 1 }
 0x4bb   :  { %1001 = vsyncpa [#allocation4 + $0x1], 1 }

</bundles_post_ra>
